<compile_context>
chip_gen: v7x
topology: tpu7x:2x2x1
jax: 0.10.0
libtpu: 0.0.40
codegen_flags: <defaults>
</compile_context>

<pallas_src>
import functools

import jax
import jax.numpy as jnp
from jax import lax
from jax.experimental import pallas as pl
from jax.experimental.pallas import tpu as pltpu


def _round_up(x, m):
    return (x + m - 1) // m * m


def attention_kernel(x_ref, wqkv_ref, wout_ref, bout_ref, o_ref,
                     q_scr, k_scr, v_scr, *, heads, n_valid):
    """One (batch, query-tile) grid step.

    x_ref:    (1, N_pad, D)  bf16  full (padded) sequence of this batch
    wqkv_ref: (D, 3D)        bf16  qkv projection (softmax scale folded into Q cols)
    wout_ref: (D, D)         bf16  output projection
    bout_ref: (1, D)         f32   output bias
    o_ref:    (1, TQ, D)           output tile
    q_scr/k_scr/v_scr: (N_pad, D)  bf16 VMEM scratch, persistent across qt steps
    """
    qt = pl.program_id(1)
    N_pad, D = q_scr.shape
    dh = D // heads
    TQ = o_ref.shape[1]

    # --- Projection hoisted out of the query-tile loop: once per batch. -------
    @pl.when(qt == 0)
    def _():
        x_full = x_ref[0]                                            # (N_pad, D) bf16
        qkv = jnp.dot(x_full, wqkv_ref[...],
                      preferred_element_type=jnp.float32)            # (N_pad, 3D) f32
        q_scr[...] = qkv[:, :D].astype(jnp.bfloat16)                 # already scaled
        k_scr[...] = qkv[:, D:2 * D].astype(jnp.bfloat16)
        v_scr[...] = qkv[:, 2 * D:].astype(jnp.bfloat16)

    row0 = pl.multiple_of(qt * TQ, TQ)
    q = q_scr[pl.ds(row0, TQ), :]                                    # (TQ, D) bf16
    k = k_scr[...]                                                   # (N_pad, D) bf16
    v = v_scr[...]                                                   # (N_pad, D) bf16

    # Static mask for key columns coming from zero-padded rows (trace-time branch).
    mask = None
    if n_valid < N_pad:
        mask = lax.broadcasted_iota(jnp.int32, (TQ, N_pad), 1) < n_valid

    # --- Per-head attention: only one head's (TQ, N_pad) tensors live at once. -
    o_heads = []
    for h in range(heads):
        q_h = q[:, h * dh:(h + 1) * dh]                              # (TQ, dh)
        k_h = k[:, h * dh:(h + 1) * dh]                              # (N_pad, dh)
        v_h = v[:, h * dh:(h + 1) * dh]                              # (N_pad, dh)

        # Contraction over the trailing dim of both operands: no k transpose.
        s = jnp.einsum('qd,kd->qk', q_h, k_h,
                       preferred_element_type=jnp.float32)           # (TQ, N_pad) f32
        if mask is not None:
            s = jnp.where(mask, s, -1e30)

        s = s - jnp.max(s, axis=-1, keepdims=True)
        e = jnp.exp(s)
        p = e * pl.reciprocal(jnp.sum(e, axis=-1, keepdims=True), approx=True)

        o_heads.append(jnp.dot(p.astype(jnp.bfloat16), v_h,
                               preferred_element_type=jnp.float32))  # (TQ, dh) f32

    # Merge heads along lanes, then a single full-depth output projection.
    o_cat = jnp.concatenate(o_heads, axis=-1).astype(jnp.bfloat16)   # (TQ, D)
    out = jnp.dot(o_cat, wout_ref[...],
                  preferred_element_type=jnp.float32) + bout_ref[...]  # (TQ, D) f32

    # Single lane-dense slab store of the whole output tile.
    o_ref[0] = out.astype(o_ref.dtype)


def _const_block_spec(block_shape, index_map):
    """BlockSpec for blocks whose index never changes: single-buffered if possible."""
    try:
        return pl.BlockSpec(block_shape, index_map, pipeline_mode=pl.Buffered(1))
    except (AttributeError, TypeError):
        return pl.BlockSpec(block_shape, index_map)


def attention_forward(x, w_qkv, w_out, b_out, *, heads, dim_head, q_tile=128):
    """Pallas-based equivalent of Attention.forward.

    x:      (B, N, D) float32
    w_qkv:  (D, 3D)   float32   (no bias, as in nn.Linear(dim, 3*dim, bias=False))
    w_out:  (D, D)    float32
    b_out:  (D,)      float32
    """
    B, N, D = x.shape
    assert D % heads == 0
    # NB: PyTorch uses the ctor dim_head (not D // heads) for the softmax scale.
    scale = float(dim_head) ** (-0.5)

    # Query tiling + zero padding so N_pad % TQ == 0 (ragged N handled by masking
    # padded key columns in the kernel and slicing padded query rows afterwards).
    # TODO(synk): raise q_tile to 256-512 on 128 MiB-VMEM parts (v5e/v6e) for big N.
    TQ = N if N <= q_tile else q_tile
    TQ = _round_up(TQ, 8)
    N_pad = _round_up(N, TQ)
    NQ = N_pad // TQ

    # One-time wrapper-level repacking (layout plumbing, not compute):
    #  * fold the softmax scale into the Q columns (exact: 0.125 for dim_head=64)
    #  * bf16 operands for the MXU, f32 bias.
    w_qkv_scaled = jnp.concatenate([w_qkv[:, :D] * scale, w_qkv[:, D:]], axis=-1)
    w_qkv_bf = w_qkv_scaled.astype(jnp.bfloat16)                      # (D, 3D)
    w_out_bf = w_out.astype(jnp.bfloat16)                             # (D, D)
    b_out2d = b_out.reshape(1, D).astype(jnp.float32)                 # (1, D)

    x_bf = x.astype(jnp.bfloat16)
    if N_pad != N:
        x_bf = jnp.pad(x_bf, ((0, 0), (0, N_pad - N), (0, 0)))

    kernel = functools.partial(attention_kernel, heads=heads, n_valid=N)

    # Explicit VMEM budget (default scoped limit is only 16/32 MiB).
    vmem_est = (2 * N_pad * D * 2                    # x block (double-buffered, bf16)
                + (3 * D * D + D * D) * 2 + D * 4    # weights (single-buffered) + bias
                + 3 * N_pad * D * 2                  # q/k/v scratch (bf16)
                + 2 * TQ * D * 4                     # output tile (double-buffered)
                + 4 * TQ * N_pad * 4)                # one head's score/prob temporaries
    vmem_limit = int(min(100 * 2**20, max(32 * 2**20, 2 * vmem_est)))

    flops = int(B * (2 * N * D * 3 * D + 4 * N * N * D + 2 * N * D * D))
    transcendentals = int(B * heads * N * N)
    bytes_accessed = int(x_bf.size * 2 + w_qkv_bf.size * 2 + w_out_bf.size * 2
                         + b_out2d.size * 4 + B * N_pad * D * 4)

    out = pl.pallas_call(
        kernel,
        out_shape=jax.ShapeDtypeStruct((B, N_pad, D), x.dtype),
        grid_spec=pltpu.PrefetchScalarGridSpec(
            num_scalar_prefetch=0,
            grid=(B, NQ),                                     # qt innermost
            in_specs=[
                pl.BlockSpec((1, N_pad, D), lambda b, qt: (b, 0, 0)),   # x (per batch)
                _const_block_spec((D, 3 * D), lambda b, qt: (0, 0)),    # w_qkv
                _const_block_spec((D, D), lambda b, qt: (0, 0)),        # w_out
                _const_block_spec((1, D), lambda b, qt: (0, 0)),        # bias
            ],
            out_specs=pl.BlockSpec((1, TQ, D), lambda b, qt: (b, qt, 0)),
            scratch_shapes=[pltpu.VMEM((N_pad, D), jnp.bfloat16)] * 3,
        ),
        compiler_params=pltpu.CompilerParams(
            dimension_semantics=("parallel", "arbitrary"),
            vmem_limit_bytes=vmem_limit),
        cost_estimate=pl.CostEstimate(
            flops=flops,
            transcendentals=transcendentals,
            bytes_accessed=bytes_accessed),
    )(x_bf, w_qkv_bf, w_out_bf, b_out2d)

    return out[:, :N, :] if N_pad != N else out


def attention_reference(x, w_qkv, w_out, b_out, *, heads, dim_head):
    """Pure-JAX f32 reference mirroring the PyTorch module exactly."""
    B, N, D = x.shape
    scale = float(dim_head) ** (-0.5)
    qkv = x @ w_qkv                                   # (B, N, 3D)
    q, k, v = jnp.split(qkv, 3, axis=-1)

    def split_heads(t):
        return t.reshape(B, N, heads, -1).transpose(0, 2, 1, 3)  # (B, H, N, dh)

    q, k, v = map(split_heads, (q, k, v))
    dots = jnp.einsum("bhqd,bhkd->bhqk", q, k) * scale
    attn = jax.nn.softmax(dots, axis=-1)
    out = jnp.einsum("bhqk,bhkd->bhqd", attn, v)
    out = out.transpose(0, 2, 1, 3).reshape(B, N, D)
    return out @ w_out + b_out


if __name__ == "__main__":
    # Small shapes consistent with the module: batch=2, seq(n_patches)=8, dim=32.
    B, N, D = 2, 8, 32
    HEADS = 4
    DIM_HEAD = 64          # default ctor arg — only affects the scale factor

    key = jax.random.PRNGKey(0)
    kx, kqkv, kwo, kbo = jax.random.split(key, 4)

    x = jax.random.normal(kx, (B, N, D), dtype=jnp.float32)
    # Deterministic "Linear-like" init (uniform in +-1/sqrt(fan_in)).
    bound = 1.0 / (D ** 0.5)
    w_qkv = jax.random.uniform(kqkv, (D, 3 * D), minval=-bound, maxval=bound,
                               dtype=jnp.float32)
    w_out = jax.random.uniform(kwo, (D, D), minval=-bound, maxval=bound,
                               dtype=jnp.float32)
    b_out = jax.random.uniform(kbo, (D,), minval=-bound, maxval=bound,
                               dtype=jnp.float32)

    out = attention_forward(x, w_qkv, w_out, b_out, heads=HEADS, dim_head=DIM_HEAD)
    out = jax.block_until_ready(out)

    ref = attention_reference(x, w_qkv, w_out, b_out, heads=HEADS, dim_head=DIM_HEAD)
    assert out.shape == (B, N, D)
    # bf16 MXU operands (f32 accumulate) + approx reciprocal -> relaxed tolerance.
    assert jnp.allclose(out, ref, atol=2e-2, rtol=2e-2), "mismatch vs reference"

    print("KERNEL_OK")
</pallas_src>

<mosaic_0001>
module attributes {stable_mosaic.version = 11 : i64} {
  func.func @attention_kernel(%arg0: i32, %arg1: i32, %arg2: memref<1x8x32xbf16, #tpu.memory_space<vmem>>, %arg3: memref<32x96xbf16, #tpu.memory_space<vmem>>, %arg4: memref<32x32xbf16, #tpu.memory_space<vmem>>, %arg5: memref<1x32xf32, #tpu.memory_space<vmem>>, %arg6: memref<1x8x32xf32, #tpu.memory_space<vmem>>, %arg7: memref<8x32xbf16, #tpu.memory_space<vmem>>, %arg8: memref<8x32xbf16, #tpu.memory_space<vmem>>, %arg9: memref<8x32xbf16, #tpu.memory_space<vmem>>) attributes {dimension_semantics = [#tpu.dimension_semantics<parallel>, #tpu.dimension_semantics<arbitrary>], iteration_bounds = array<i64: 2, 1>, scalar_prefetch = 0 : i64, scratch_operands = 3 : i64, tpu.core_type = #tpu.core_type<tc>, window_params = [{transform_indices = @transform_0, window_bounds = array<i64: 1, 8, 32>}, {pipeline_mode = #tpu.pipeline_mode<synchronous>, transform_indices = @transform_1, window_bounds = array<i64: 32, 96>}, {pipeline_mode = #tpu.pipeline_mode<synchronous>, transform_indices = @transform_2, window_bounds = array<i64: 32, 32>}, {pipeline_mode = #tpu.pipeline_mode<synchronous>, transform_indices = @transform_3, window_bounds = array<i64: 1, 32>}, {transform_indices = @transform_4, window_bounds = array<i64: 1, 8, 32>}]} {
    %c0_i32 = arith.constant 0 : i32
    %0 = arith.cmpi eq, %arg1, %c0_i32 : i32
    %1 = arith.extui %0 : i1 to i32
    %c0_i32_0 = arith.constant 0 : i32
    %2 = arith.cmpi ne, %1, %c0_i32_0 : i32
    scf.if %2 {
      %c0_28 = arith.constant 0 : index
      %c0_29 = arith.constant 0 : index
      %c0_30 = arith.constant 0 : index
      %83 = vector.load %arg2[%c0_28, %c0_29, %c0_30] : memref<1x8x32xbf16, #tpu.memory_space<vmem>>, vector<1x8x32xbf16>
      %84 = vector.shape_cast %83 : vector<1x8x32xbf16> to vector<8x32xbf16>
      %c0_31 = arith.constant 0 : index
      %c0_32 = arith.constant 0 : index
      %85 = vector.load %arg3[%c0_31, %c0_32] : memref<32x96xbf16, #tpu.memory_space<vmem>>, vector<32x96xbf16>
      %cst_33 = arith.constant dense<0.000000e+00> : vector<8x96xf32>
      %86 = tpu.matmul %84, %85, %cst_33 {dimension_numbers = #tpu.dot_dimension_numbers<[1], [0], [0], [1], [0, 0, 1, 1], [], []>} : vector<8x32xbf16>, vector<32x96xbf16>, vector<8x96xf32> -> vector<8x96xf32>
      %87 = vector.extract_strided_slice %86 {offsets = [0, 0], sizes = [8, 32], strides = [1, 1]} : vector<8x96xf32> to vector<8x32xf32>
      %88 = arith.truncf %87 : vector<8x32xf32> to vector<8x32xbf16>
      %c0_34 = arith.constant 0 : index
      %c0_35 = arith.constant 0 : index
      %89 = vector.load %arg7[%c0_34, %c0_35] : memref<8x32xbf16, #tpu.memory_space<vmem>>, vector<8x32xbf16>
      tpu.vector_store %arg7[%c0_34, %c0_35], %88 {strides = array<i32>} : memref<8x32xbf16, #tpu.memory_space<vmem>>, vector<8x32xbf16>,
      %90 = vector.extract_strided_slice %86 {offsets = [0, 32], sizes = [8, 32], strides = [1, 1]} : vector<8x96xf32> to vector<8x32xf32>
      %91 = arith.truncf %90 : vector<8x32xf32> to vector<8x32xbf16>
      %c0_36 = arith.constant 0 : index
      %c0_37 = arith.constant 0 : index
      %92 = vector.load %arg8[%c0_36, %c0_37] : memref<8x32xbf16, #tpu.memory_space<vmem>>, vector<8x32xbf16>
      tpu.vector_store %arg8[%c0_36, %c0_37], %91 {strides = array<i32>} : memref<8x32xbf16, #tpu.memory_space<vmem>>, vector<8x32xbf16>,
      %93 = vector.extract_strided_slice %86 {offsets = [0, 64], sizes = [8, 32], strides = [1, 1]} : vector<8x96xf32> to vector<8x32xf32>
      %94 = arith.truncf %93 : vector<8x32xf32> to vector<8x32xbf16>
      %c0_38 = arith.constant 0 : index
      %c0_39 = arith.constant 0 : index
      %95 = vector.load %arg9[%c0_38, %c0_39] : memref<8x32xbf16, #tpu.memory_space<vmem>>, vector<8x32xbf16>
      tpu.vector_store %arg9[%c0_38, %c0_39], %94 {strides = array<i32>} : memref<8x32xbf16, #tpu.memory_space<vmem>>, vector<8x32xbf16>,
    } else {
    }
    %c8_i32 = arith.constant 8 : i32
    %3 = arith.muli %arg1, %c8_i32 : i32
    %4 = tpu.assume_multiple %3, 8 : i32
    %5 = arith.index_cast %4 : i32 to index
    %c0 = arith.constant 0 : index
    %6 = vector.load %arg7[%5, %c0] : memref<8x32xbf16, #tpu.memory_space<vmem>>, vector<8x32xbf16>
    %c0_1 = arith.constant 0 : index
    %c0_2 = arith.constant 0 : index
    %7 = vector.load %arg8[%c0_1, %c0_2] : memref<8x32xbf16, #tpu.memory_space<vmem>>, vector<8x32xbf16>
    %c0_3 = arith.constant 0 : index
    %c0_4 = arith.constant 0 : index
    %8 = vector.load %arg9[%c0_3, %c0_4] : memref<8x32xbf16, #tpu.memory_space<vmem>>, vector<8x32xbf16>
    %9 = vector.extract_strided_slice %6 {offsets = [0, 0], sizes = [8, 8], strides = [1, 1]} : vector<8x32xbf16> to vector<8x8xbf16>
    %10 = vector.extract_strided_slice %7 {offsets = [0, 0], sizes = [8, 8], strides = [1, 1]} : vector<8x32xbf16> to vector<8x8xbf16>
    %11 = vector.extract_strided_slice %8 {offsets = [0, 0], sizes = [8, 8], strides = [1, 1]} : vector<8x32xbf16> to vector<8x8xbf16>
    "tpu.trace_start"() <{level = 10 : i32, message = "qd,kd->qk"}> : () -> ()
    %cst = arith.constant dense<0.000000e+00> : vector<8x8xf32>
    %12 = tpu.matmul %9, %10, %cst {dimension_numbers = #tpu.dot_dimension_numbers<[1], [1], [0], [0], [0, 0, 1, 0], [], []>} : vector<8x8xbf16>, vector<8x8xbf16>, vector<8x8xf32> -> vector<8x8xf32>
    "tpu.trace_stop"() : () -> ()
    %cst_5 = arith.constant dense<0xFF800000> : vector<8xf32>
    %13 = vector.multi_reduction <maximumf>, %12, %cst_5 [1] : vector<8x8xf32> to vector<8xf32>
    %14 = vector.shape_cast %13 : vector<8xf32> to vector<8x1xf32>
    %15 = vector.broadcast %14 : vector<8x1xf32> to vector<8x8xf32>
    %16 = arith.subf %12, %15 : vector<8x8xf32>
    %17 = math.exp %16 : vector<8x8xf32>
    %cst_6 = arith.constant dense<0.000000e+00> : vector<8xf32>
    %18 = vector.multi_reduction <add>, %17, %cst_6 [1] : vector<8x8xf32> to vector<8xf32>
    %19 = vector.shape_cast %18 : vector<8xf32> to vector<8x1xf32>
    %20 = tpu.reciprocal %19 {approx = true} : vector<8x1xf32> -> vector<8x1xf32>
    %21 = vector.broadcast %20 : vector<8x1xf32> to vector<8x8xf32>
    %22 = arith.mulf %17, %21 : vector<8x8xf32>
    %23 = arith.truncf %22 : vector<8x8xf32> to vector<8x8xbf16>
    %cst_7 = arith.constant dense<0.000000e+00> : vector<8x8xf32>
    %24 = tpu.matmul %23, %11, %cst_7 {dimension_numbers = #tpu.dot_dimension_numbers<[1], [0], [0], [1], [0, 0, 1, 1], [], []>} : vector<8x8xbf16>, vector<8x8xbf16>, vector<8x8xf32> -> vector<8x8xf32>
    %25 = vector.extract_strided_slice %6 {offsets = [0, 8], sizes = [8, 8], strides = [1, 1]} : vector<8x32xbf16> to vector<8x8xbf16>
    %26 = vector.extract_strided_slice %7 {offsets = [0, 8], sizes = [8, 8], strides = [1, 1]} : vector<8x32xbf16> to vector<8x8xbf16>
    %27 = vector.extract_strided_slice %8 {offsets = [0, 8], sizes = [8, 8], strides = [1, 1]} : vector<8x32xbf16> to vector<8x8xbf16>
    "tpu.trace_start"() <{level = 10 : i32, message = "qd,kd->qk"}> : () -> ()
    %cst_8 = arith.constant dense<0.000000e+00> : vector<8x8xf32>
    %28 = tpu.matmul %25, %26, %cst_8 {dimension_numbers = #tpu.dot_dimension_numbers<[1], [1], [0], [0], [0, 0, 1, 0], [], []>} : vector<8x8xbf16>, vector<8x8xbf16>, vector<8x8xf32> -> vector<8x8xf32>
    "tpu.trace_stop"() : () -> ()
    %cst_9 = arith.constant dense<0xFF800000> : vector<8xf32>
    %29 = vector.multi_reduction <maximumf>, %28, %cst_9 [1] : vector<8x8xf32> to vector<8xf32>
    %30 = vector.shape_cast %29 : vector<8xf32> to vector<8x1xf32>
    %31 = vector.broadcast %30 : vector<8x1xf32> to vector<8x8xf32>
    %32 = arith.subf %28, %31 : vector<8x8xf32>
    %33 = math.exp %32 : vector<8x8xf32>
    %cst_10 = arith.constant dense<0.000000e+00> : vector<8xf32>
    %34 = vector.multi_reduction <add>, %33, %cst_10 [1] : vector<8x8xf32> to vector<8xf32>
    %35 = vector.shape_cast %34 : vector<8xf32> to vector<8x1xf32>
    %36 = tpu.reciprocal %35 {approx = true} : vector<8x1xf32> -> vector<8x1xf32>
    %37 = vector.broadcast %36 : vector<8x1xf32> to vector<8x8xf32>
    %38 = arith.mulf %33, %37 : vector<8x8xf32>
    %39 = arith.truncf %38 : vector<8x8xf32> to vector<8x8xbf16>
    %cst_11 = arith.constant dense<0.000000e+00> : vector<8x8xf32>
    %40 = tpu.matmul %39, %27, %cst_11 {dimension_numbers = #tpu.dot_dimension_numbers<[1], [0], [0], [1], [0, 0, 1, 1], [], []>} : vector<8x8xbf16>, vector<8x8xbf16>, vector<8x8xf32> -> vector<8x8xf32>
    %41 = vector.extract_strided_slice %6 {offsets = [0, 16], sizes = [8, 8], strides = [1, 1]} : vector<8x32xbf16> to vector<8x8xbf16>
    %42 = vector.extract_strided_slice %7 {offsets = [0, 16], sizes = [8, 8], strides = [1, 1]} : vector<8x32xbf16> to vector<8x8xbf16>
    %43 = vector.extract_strided_slice %8 {offsets = [0, 16], sizes = [8, 8], strides = [1, 1]} : vector<8x32xbf16> to vector<8x8xbf16>
    "tpu.trace_start"() <{level = 10 : i32, message = "qd,kd->qk"}> : () -> ()
    %cst_12 = arith.constant dense<0.000000e+00> : vector<8x8xf32>
    %44 = tpu.matmul %41, %42, %cst_12 {dimension_numbers = #tpu.dot_dimension_numbers<[1], [1], [0], [0], [0, 0, 1, 0], [], []>} : vector<8x8xbf16>, vector<8x8xbf16>, vector<8x8xf32> -> vector<8x8xf32>
    "tpu.trace_stop"() : () -> ()
    %cst_13 = arith.constant dense<0xFF800000> : vector<8xf32>
    %45 = vector.multi_reduction <maximumf>, %44, %cst_13 [1] : vector<8x8xf32> to vector<8xf32>
    %46 = vector.shape_cast %45 : vector<8xf32> to vector<8x1xf32>
    %47 = vector.broadcast %46 : vector<8x1xf32> to vector<8x8xf32>
    %48 = arith.subf %44, %47 : vector<8x8xf32>
    %49 = math.exp %48 : vector<8x8xf32>
    %cst_14 = arith.constant dense<0.000000e+00> : vector<8xf32>
    %50 = vector.multi_reduction <add>, %49, %cst_14 [1] : vector<8x8xf32> to vector<8xf32>
    %51 = vector.shape_cast %50 : vector<8xf32> to vector<8x1xf32>
    %52 = tpu.reciprocal %51 {approx = true} : vector<8x1xf32> -> vector<8x1xf32>
    %53 = vector.broadcast %52 : vector<8x1xf32> to vector<8x8xf32>
    %54 = arith.mulf %49, %53 : vector<8x8xf32>
    %55 = arith.truncf %54 : vector<8x8xf32> to vector<8x8xbf16>
    %cst_15 = arith.constant dense<0.000000e+00> : vector<8x8xf32>
    %56 = tpu.matmul %55, %43, %cst_15 {dimension_numbers = #tpu.dot_dimension_numbers<[1], [0], [0], [1], [0, 0, 1, 1], [], []>} : vector<8x8xbf16>, vector<8x8xbf16>, vector<8x8xf32> -> vector<8x8xf32>
    %57 = vector.extract_strided_slice %6 {offsets = [0, 24], sizes = [8, 8], strides = [1, 1]} : vector<8x32xbf16> to vector<8x8xbf16>
    %58 = vector.extract_strided_slice %7 {offsets = [0, 24], sizes = [8, 8], strides = [1, 1]} : vector<8x32xbf16> to vector<8x8xbf16>
    %59 = vector.extract_strided_slice %8 {offsets = [0, 24], sizes = [8, 8], strides = [1, 1]} : vector<8x32xbf16> to vector<8x8xbf16>
    "tpu.trace_start"() <{level = 10 : i32, message = "qd,kd->qk"}> : () -> ()
    %cst_16 = arith.constant dense<0.000000e+00> : vector<8x8xf32>
    %60 = tpu.matmul %57, %58, %cst_16 {dimension_numbers = #tpu.dot_dimension_numbers<[1], [1], [0], [0], [0, 0, 1, 0], [], []>} : vector<8x8xbf16>, vector<8x8xbf16>, vector<8x8xf32> -> vector<8x8xf32>
    "tpu.trace_stop"() : () -> ()
    %cst_17 = arith.constant dense<0xFF800000> : vector<8xf32>
    %61 = vector.multi_reduction <maximumf>, %60, %cst_17 [1] : vector<8x8xf32> to vector<8xf32>
    %62 = vector.shape_cast %61 : vector<8xf32> to vector<8x1xf32>
    %63 = vector.broadcast %62 : vector<8x1xf32> to vector<8x8xf32>
    %64 = arith.subf %60, %63 : vector<8x8xf32>
    %65 = math.exp %64 : vector<8x8xf32>
    %cst_18 = arith.constant dense<0.000000e+00> : vector<8xf32>
    %66 = vector.multi_reduction <add>, %65, %cst_18 [1] : vector<8x8xf32> to vector<8xf32>
    %67 = vector.shape_cast %66 : vector<8xf32> to vector<8x1xf32>
    %68 = tpu.reciprocal %67 {approx = true} : vector<8x1xf32> -> vector<8x1xf32>
    %69 = vector.broadcast %68 : vector<8x1xf32> to vector<8x8xf32>
    %70 = arith.mulf %65, %69 : vector<8x8xf32>
    %71 = arith.truncf %70 : vector<8x8xf32> to vector<8x8xbf16>
    %cst_19 = arith.constant dense<0.000000e+00> : vector<8x8xf32>
    %72 = tpu.matmul %71, %59, %cst_19 {dimension_numbers = #tpu.dot_dimension_numbers<[1], [0], [0], [1], [0, 0, 1, 1], [], []>} : vector<8x8xbf16>, vector<8x8xbf16>, vector<8x8xf32> -> vector<8x8xf32>
    %73 = tpu.concatenate %24, %40, %56, %72 in 1 : vector<8x8xf32>, vector<8x8xf32>, vector<8x8xf32>, vector<8x8xf32> -> vector<8x32xf32>
    %74 = arith.truncf %73 : vector<8x32xf32> to vector<8x32xbf16>
    %c0_20 = arith.constant 0 : index
    %c0_21 = arith.constant 0 : index
    %75 = vector.load %arg4[%c0_20, %c0_21] : memref<32x32xbf16, #tpu.memory_space<vmem>>, vector<32x32xbf16>
    %cst_22 = arith.constant dense<0.000000e+00> : vector<8x32xf32>
    %76 = tpu.matmul %74, %75, %cst_22 {dimension_numbers = #tpu.dot_dimension_numbers<[1], [0], [0], [1], [0, 0, 1, 1], [], []>} : vector<8x32xbf16>, vector<32x32xbf16>, vector<8x32xf32> -> vector<8x32xf32>
    %c0_23 = arith.constant 0 : index
    %c0_24 = arith.constant 0 : index
    %77 = vector.load %arg5[%c0_23, %c0_24] : memref<1x32xf32, #tpu.memory_space<vmem>>, vector<1x32xf32>
    %78 = vector.broadcast %77 : vector<1x32xf32> to vector<8x32xf32>
    %79 = arith.addf %76, %78 : vector<8x32xf32>
    %c0_25 = arith.constant 0 : index
    %c0_26 = arith.constant 0 : index
    %c0_27 = arith.constant 0 : index
    %80 = vector.load %arg6[%c0_25, %c0_26, %c0_27] : memref<1x8x32xf32, #tpu.memory_space<vmem>>, vector<1x8x32xf32>
    %81 = vector.shape_cast %80 : vector<1x8x32xf32> to vector<8x32xf32>
    %82 = vector.shape_cast %79 : vector<8x32xf32> to vector<1x8x32xf32>
    tpu.vector_store %arg6[%c0_25, %c0_26, %c0_27], %82 {strides = array<i32>} : memref<1x8x32xf32, #tpu.memory_space<vmem>>, vector<1x8x32xf32>,
    return
  }
  func.func @transform_0(%arg0: i32, %arg1: i32) -> (i32, i32, i32) {
    %c0_i32 = arith.constant 0 : i32
    %c0_i32_0 = arith.constant 0 : i32
    %c0_i32_1 = arith.constant 0 : i32
    return %arg0, %c0_i32, %c0_i32_0 : i32, i32, i32
  }
  func.func @transform_1(%arg0: i32, %arg1: i32) -> (i32, i32) {
    %c0_i32 = arith.constant 0 : i32
    %c0_i32_0 = arith.constant 0 : i32
    %c0_i32_1 = arith.constant 0 : i32
    return %c0_i32, %c0_i32_0 : i32, i32
  }
  func.func @transform_2(%arg0: i32, %arg1: i32) -> (i32, i32) {
    %c0_i32 = arith.constant 0 : i32
    %c0_i32_0 = arith.constant 0 : i32
    %c0_i32_1 = arith.constant 0 : i32
    return %c0_i32, %c0_i32_0 : i32, i32
  }
  func.func @transform_3(%arg0: i32, %arg1: i32) -> (i32, i32) {
    %c0_i32 = arith.constant 0 : i32
    %c0_i32_0 = arith.constant 0 : i32
    %c0_i32_1 = arith.constant 0 : i32
    return %c0_i32, %c0_i32_0 : i32, i32
  }
  func.func @transform_4(%arg0: i32, %arg1: i32) -> (i32, i32, i32) {
    %c0_i32 = arith.constant 0 : i32
    %c0_i32_0 = arith.constant 0 : i32
    return %arg0, %arg1, %c0_i32 : i32, i32, i32
  }
}

</mosaic_0001>

<bundles_post_ra>
// kernel: tpu_custom_call.1
= control target key start
LH: loop header
LB: loop body
LE: loop exit
PB: predicated region body
PF: predicated region fallthrough
CT: control target
= control target key end

     0   :  { %9 = vsyncpa [#allocation6], 0  ;;  %s1777_s0 = inlined_call_operand.hbm [shape: bf16[2,8,32], index: 0, kind: input, shape index: {}]   ;;  %s1778_s1 = inlined_call_operand.hbm [shape: bf16[32,96], index: 1, kind: input, shape index: {}]   ;;  %s1779_s2 = inlined_call_operand.hbm [shape: bf16[32,32], index: 2, kind: input, shape index: {}]   ;;  %s1780_s3 = inlined_call_operand.vmem [shape: f32[1,32], index: 3, kind: input, shape index: {}]   ;;  %s1781_s4 = inlined_call_operand.hbm [shape: f32[2,8,32], index: 4, kind: output, shape index: {}]  }
   0x1   :  { %11 = vsyncpa [#allocation6 + $0x1], 0 }
   0x2   :  { %12 = vsyncpa [#allocation9], 0 }
   0x3   :  { %13 = vsyncpa [#allocation7], 0 }
   0x4   :  { %15 = vsyncpa [#allocation7 + $0x1], 0  ;;  %s1446_s15 = smov 0   ;;  %s1448_s16 = smov 0  }
   0x5   :  { %s1450_s17 = smov 0   ;;  %s1452_s18 = smov 0  }
   0x6   :  { %s1454_s19 = smov 0   ;;  %s1456_s20 = smov 0  }
   0x7 LB: > { %s990_s21 = sadd.s32 4294967295, %s1403_s20   ;;  %s991_s22 = sadd.s32 4294967294, %s1403_s20   ;;  %s1403_s20 = sphi %s1456_s20, %s21_s20   ;;  %s1399_s19 = sphi %s1454_s19, %s1803_s19   ;;  %s1395_s18 = sphi %s1452_s18, %s1802_s18   ;;  %s1391_s17 = sphi %s1450_s17, %s1801_s17   ;;  %s1387_s16 = sphi %s1448_s16, %s1800_s16   ;;  %s1383_s15 = sphi %s1446_s15, %s1799_s15  }
   0x8   : > { %p53_p0 = scmp.ne.s32.totalorder %s1387_s16, %s1383_s15  ;;  %p1480_p1 = scmp.eq.s32.totalorder %s990_s21, 0 }
   0x9   : > { %p1484_p2 = scmp.eq.s32.totalorder %s990_s21, 1  ;;  %p148_p3 = scmp.eq.s32.totalorder %s991_s22, 1 }
   0xa   : > { %s1786_s23 = scalar_select %p1480_p1, 1, 0 }
   0xb   : > { %p1490_p4 = por %p1480_p1, %p53_p0  ;;  %p992_p5 = scmp.ge.s32.totalorder %s1403_s20, 1 }
   0xc   : > { %p1495_p6 = por %p148_p3, %p53_p0  ;;  %p155_p7 = scmp.lt.s32.totalorder %s1403_s20, 3 }
   0xd   : > { %s1788_s25 = scalar_select %p1490_p4, 1, 0 }
   0xe   : > { %s1789_s26 = scalar_select %p1495_p6, 1, 0 }
   0xf   : > { %p1500_p8 = pnand %p992_p5, %p155_p7  ;;  %s1405_s28 = smov [#allocation8]  }
  0x10   : > { %s167_s29 = sshll.u32 %s1405_s28, 4  ;;  %s1406_s5 = smov [#allocation10]   ;;  %s1504_s29 = int_to_ptr.vmem [resolvable:$true] %s167_s29 }
  0x11   : > { %p1125_p9 = pneg %p1500_p8  ;;  %s180_s6 = sshll.u32 %s1406_s5, 4  ;;  %s1515_s6 = int_to_ptr.vmem [resolvable:$true] %s180_s6 }
  0x12   : > { %s1231_s9 = scalar_lea.hbm %s1778_s1, 256 }
  0x13   : > { %p1511_p11 = pnand %p1125_p9, %p1480_p1  ;;  %p1232_p12 = scmp.ne.s32.totalorder %s1778_s1, %s1231_s9 }
  0x14   : > { %p1238_p5 = scmp.lt.u32.totalorder %s1231_s9, %s1778_s1 }
  0x15   : > { %p1233_p13 = pneg %p1511_p11 }
  0x17   : > { %p1234_p0 = pnand %p1233_p13, %p1232_p12 }
  0x19   : > { %p1235_p3 = pneg %p1234_p0 }
  0x1b   : > { %p1240_p7 = pnand %p1238_p5, %p1235_p3 }
  0x1d   : > { %1243 = shalt.err (!%p1240_p7)
}
  0x1e   : > { %s1244_s14 = scalar_lea.vmem %s1504_s29, 256  ;;  %p1252_p1 = scmp.lt.s32.totalorder %s1504_s29, %s1504_s29 }
  0x1f   : > { %p1245_p9 = scmp.ne.s32.totalorder %s1504_s29, %s1244_s14  ;;  %p1253_p12 = scmp.lt.s32.totalorder %s1244_s14, %s1244_s14 }
  0x21   : > { %p1247_p10 = pnand %p1245_p9, %p1233_p13  ;;  %p1254_p0 = por %p1253_p12, %p1252_p1 }
  0x23   : > { %p1248_p6 = pneg %p1247_p10 }
  0x25   : > { %p1255_p4 = pnand %p1254_p0, %p1248_p6 }
  0x27   : > { %1258 = shalt.err (!%p1255_p4)
}
  0x28   : > { %s1407_s21 = smov 64   ;;  %s1408_s22 = smov 4  }
  0x29   : > { %1128 = dma.hbm_to_vmem [thread:$0]  (!%p1511_p11), %s1778_s1, 256, %s1504_s29, [#allocation9], %s1407_s21, %s1407_s21, %s1408_s22  }
  0x2a   : > { %s1259_s9 = scalar_lea.hbm %s1779_s2, 256 }
  0x2b   : > { %p1260_p1 = scmp.ne.s32.totalorder %s1779_s2, %s1259_s9  ;;  %p1266_p10 = scmp.lt.u32.totalorder %s1259_s9, %s1779_s2 }
  0x2d   : > { %p1262_p4 = pnand %p1260_p1, %p1233_p13 }
  0x2f   : > { %p1263_p6 = pneg %p1262_p4 }
  0x31   : > { %p1268_p3 = pnand %p1266_p10, %p1263_p6 }
  0x33   : > { %1271 = shalt.err (!%p1268_p3)
}
  0x34   : > { %s1272_s29 = scalar_lea.vmem %s1515_s6, 256  ;;  %p1280_p12 = scmp.lt.s32.totalorder %s1515_s6, %s1515_s6 }
  0x35   : > { %p1273_p5 = scmp.ne.s32.totalorder %s1515_s6, %s1272_s29  ;;  %p1281_p0 = scmp.lt.s32.totalorder %s1272_s29, %s1272_s29 }
  0x37   : > { %p1275_p7 = pnand %p1273_p5, %p1233_p13  ;;  %p1282_p1 = por %p1281_p0, %p1280_p12 }
  0x39   : > { %p1276_p9 = pneg %p1275_p7 }
  0x3b   : > { %p1283_p4 = pnand %p1282_p1, %p1276_p9 }
  0x3d   : > { %1286 = shalt.err (!%p1283_p4)
}
  0x3e   : > { %1131 = dma.hbm_to_vmem [thread:$0]  (!%p1511_p11), %s1779_s2, 256, %s1515_s6, [#allocation9], %s1407_s21, %s1407_s21, %s1408_s22  }
  0x3f   : > { %s33_s5 = sadd.s32 1, %s1399_s19  ;;  %s40_s7 = sadd.s32 1, %s1391_s17 }
  0x40   : > { %p35_p13 = scmp.ge.s32.totalorder %s33_s5, 2  ;;  %p47_p6 = scmp.ne.s32.totalorder %s1391_s17, %s1387_s16 }
  0x41   : > { %p48_p10 = scmp.eq.s32.totalorder %s1403_s20, 0  ;;  %p1142_p3 = scmp.lt.s32.totalorder %s1403_s20, 2 }
  0x42   : > { %s1805_s5 = smov (%p35_p13, %s33_s5), 0  ;;  %p1579_p7 = por %p1484_p2, %p47_p6 }
  0x43   : > { %p49_p5 = por %p48_p10, %p47_p6  ;;  %s37_s8 = ssub.s32 %s1399_s19, %s1805_s5 }
  0x44   : > { %s1792_s30 = scalar_select %p1579_p7, 1, 0 }
  0x45   : > { %s197_s9 = sand.u32 1, %s1391_s17   ;;  %p38_p9 = scmp.eq.s32.totalorder %s37_s8, 0 }
  0x46   : > { %s996_s6 = sshll.u32 %s197_s9, 2  ;;  %s997_s21 = sshll.u32 %s1399_s19, 6 }
  0x47   : > { %s1588_s22 = scalar_select %p38_p9, %s1391_s17, %s40_s7  }
  0x48   : > { %s1593_s12 = scalar_lea.hbm %s1777_s0, %s997_s21  ;;  %s201_s24 = scalar_lea.vmem [#allocation5], %s996_s6 }
  0x49   : > { %s208_s13 = sshll.u32 %s201_s24, 4  ;;  %p1597_p2 = pnand %p1142_p3, %p49_p5  ;;  %s1601_s13 = int_to_ptr.vmem [resolvable:$true] %s208_s13 }
  0x4a   : > { %s198_s14 = scalar_lea.sflag [#allocation6], %s197_s9  ;;  %s1287_s28 = scalar_lea.hbm %s1593_s12, 64 }
  0x4b   : > { %p1288_p11 = scmp.ne.s32.totalorder %s1593_s12, %s1287_s28  ;;  %p1289_p12 = pneg %p1597_p2 }
  0x4c   : > { %s1292_s6 = scalar_lea.hbm %s1777_s0, 128  ;;  %p1293_p4 = scmp.lt.u32.totalorder %s1593_s12, %s1777_s0 }
  0x4d   : > { %p1290_p0 = pnand %p1289_p12, %p1288_p11  ;;  %p1294_p13 = scmp.lt.u32.totalorder %s1292_s6, %s1287_s28 }
  0x4e   : > { %p1296_p10 = scmp.lt.u32.totalorder %s1287_s28, %s1593_s12 }
  0x4f   : > { %p1291_p1 = pneg %p1290_p0  ;;  %p1295_p6 = por %p1294_p13, %p1293_p4 }
  0x51   : > { %p1297_p3 = por %p1296_p10, %p1295_p6 }
  0x53   : > { %p1298_p5 = pnand %p1297_p3, %p1291_p1 }
  0x55   : > { %1301 = shalt.err (!%p1298_p5)
}
  0x56   : > { %s1302_s9 = scalar_lea.vmem %s1601_s13, 64  ;;  %s1409_s11 = smov [#allocation5]  }
  0x57   : > { %p1303_p9 = scmp.ne.s32.totalorder %s1601_s13, %s1302_s9  ;;  %s1307_s24 = sshll.u32 %s1409_s11, 4  ;;  %s1308_s24 = int_to_ptr.vmem [resolvable:$false] %s1307_s24 }
  0x58   : > { %s1309_s7 = scalar_lea.vmem %s1308_s24, 128  ;;  %p1310_p7 = scmp.lt.s32.totalorder %s1601_s13, %s1308_s24 }
  0x59   : > { %p1305_p11 = pnand %p1303_p9, %p1289_p12  ;;  %p1311_p4 = scmp.lt.s32.totalorder %s1309_s7, %s1302_s9 }
  0x5b   : > { %p1306_p0 = pneg %p1305_p11  ;;  %p1312_p13 = por %p1311_p4, %p1310_p7 }
  0x5d   : > { %p1313_p6 = pnand %p1312_p13, %p1306_p0 }
  0x5f   : > { %1316 = shalt.err (!%p1313_p6)
}
  0x60   : > { %1135 = dma.hbm_to_vmem [thread:$0]  (!%p1597_p2), %s1593_s12, 64, %s1601_s13, %s198_s14  }
  0x61   : > { %217 = sbr.rel (%p1500_p8) target bundleno = 1691 (0x69b), region = 36  ;;  %s1631_s28 = sand.u32 (!%p1500_p8), 1, %s1387_s16  }
  0x62   : > { %s999_s8 = sshll.u32 (!%p1500_p8), %s1631_s28, 2  ;;  %s220_s6 = scalar_lea.sflag (!%p1500_p8), [#allocation6], %s1631_s28 }
  0x63   : > { %s223_s21 = scalar_lea.vmem (!%p1500_p8), [#allocation5], %s999_s8  ;;  %p1794_p7 = scmp.ne.s32.totalorder (!%p1500_p8), %s1788_s25, 0 }
  0x68   : > { %1370 = dma.done.wait (%p1794_p7), %s220_s6, 64  }
  0x69   : > { %1372 = vsyncadd (%p1794_p7), %s220_s6, 4294967232  ;;  %p1795_p12 = scmp.ne.s32.totalorder %s1786_s23, 0 }
  0x6b   : > { %1374 = dma.done.wait (%p1795_p12), [#allocation9], 512  }
  0x6c   : > { %1376 = vsyncadd (%p1795_p12), [#allocation9], 4294966784  ;;  %v1410_v0 = vmov 0.0   ;;  %vm1411_vm0 = vmmov 0   ;;  %v1208_v1 = vld [vmem:[#allocation8] sm:$0xff]   ;;  %v1209_v2 = vld [vmem:[#allocation8 + $0x8] sm:$0xff]  }
  0x6d   : > { %1049 = vmatprep.subr.bf16.mxu0 %v1410_v0  ;;  %1053 = vmatprep.mubr.msk.bf16.mxu0 %vm1411_vm0, %v1410_v0  ;;  %v261_v3 = vld [vmem:[%s223_s21] sm:$0xf]  ;;  %vm278_vm1 = vcmask 261120   ;;  %vm323_vm2 = vcmask 257024   ;;  %s1412_s23 = smov 96   ;;  %s1413_s25 = smov 120  }
  0x6e   : > { %1057 = vmatprep.subr.bf16.mxu1 %v1410_v0  ;;  %1059 = vmatprep.mubr.msk.bf16.mxu1 %vm1411_vm0, %v1410_v0  ;;  %vm344_vm3 = vcmask 64512   ;;  %s1414_s27 = smov 112   ;;  %s1415_s12 = smov 104   ;;  %vm406_vm4 = vcmask 1043456   ;;  %vm802_vm5 = vcmask 130048   ;;  %vm804_vm6 = vcmask 195584  }
  0x6f   : > { %1050 = vmatpush3.bf16.msra.mxu0 %v1208_v1  ;;  %s1416_s13 = smov 64   ;;  %s1417_s29 = smov 8  }
  0x70   : > { %1051 = vmatprep.subr.bf16.mxu0 %v1410_v0  ;;  %s1418_s14 = smov 16   ;;  %s1419_s10 = smov 24  }
  0x71   : > { %s1002_s9 = sshll.u32 %s1631_s28, 3  ;;  %s1023_s7 = sshll.u32 %s1395_s18, 7 }
  0x72   : > { %s255_s8 = scalar_lea.vmem [#allocation11], %s1002_s9  ;;  %s876_s18 = scalar_lea.sflag [#allocation7], %s1631_s28 }
  0x73   : > { %1052 = vmatpush3.bf16.msra.mxu0 %v1209_v2  ;;  %s890_s6 = sshll.u32 %s255_s8, 4  ;;  %p1796_p2 = scmp.ne.s32.totalorder %s1792_s30, 0  ;;  %s1729_s6 = int_to_ptr.vmem [resolvable:$true] %s890_s6 }
  0x74   : > { %1063 = vmatprep.subr.bf16.mxu0 %v1410_v0 }
  0x76   : > { %1054 = vmatmul.mubr.msk.bf16.vlgmr.msra.gmra.mrb[0].mxu0 %vm278_vm1, %v261_v3 }
  0x77   : > { %1065 = vmatprep.mubr.msk.bf16.mxu0 %vm1411_vm0, %v1410_v0 }
 0x149   : > { %v316_v4 = vpop.f32.mrb[0].mxu0 }
 0x14a   : > { %v1654_v5 = vpack.c.bf16 %v316_v4, %v316_v4  ;;  %v1055_v6 = vpop.f32.mrb[1].mxu0 }
 0x14b   : > { %v319_v7 = vpop.f32.mrb[2].mxu0 }
 0x14c   : > { %324 = vst.msk [vmem:[#allocation2] sm:$0xf] %vm323_vm2, %v1654_v5  ;;  %328 = vrot.lane.b32.xlu0 %v1654_v5, %s1412_s23  ;;  %v1056_v8 = vpop.f32.mrb[3].mxu0 }
 0x153   : > { %v341_v9 = vld [vmem:[#allocation2] sm:$0xf] }
 0x154   : > { %v1009_v10 = vcombine.low %v341_v9, %v341_v9 }
 0x156   : > { %453 = vrot.lane.b32.xlu1 %v1009_v10, %s1413_s25 }
 0x1be   : > { %v329_v11 = vpop.permute.xlu0 %328 }
 0x1bf   : > { %331 = vst.msk [vmem:[#allocation3] sm:$0xf] %vm323_vm2, %v329_v11 }
 0x1c6   : > { %v342_v12 = vld [vmem:[#allocation3] sm:$0xf] }
 0x1c7   : > { %v349_v13 = vsel %vm344_vm3, %v342_v12, 0  ;;  %v1010_v14 = vcombine.low %v342_v12, %v342_v12 }
 0x1c8   : > { %1058 = vmatpush3.bf16.xpose.msra.mxu1 %v349_v13  ;;  %v454_v17 = vpop.permute.xlu1 %453 }
 0x1c9   : > { %458 = vrot.lane.b32.xlu0 %v1010_v14, %s1413_s25  ;;  %571 = vrot.lane.b32.xlu1 %v1010_v14, %s1414_s27 }
 0x1ca   : > { %1069 = vmatprep.subr.bf16.mxu1 %v1410_v0 }
 0x1cd   : > { %569 = vrot.lane.b32.xlu0 %v1009_v10, %s1414_s27  ;;  %681 = vrot.lane.b32.xlu1 %v1010_v14, %s1415_s12 }
 0x1cf   : > { %1060 = vmatmul.mubr.msk.bf16.vlgmr.msra.gmra.mrb[0].mxu1 %vm344_vm3, %v341_v9 }
 0x1d0   : > { %1071 = vmatprep.mubr.msk.bf16.mxu1 %vm1411_vm0, %v1410_v0 }
 0x1d1   : > { %679 = vrot.lane.b32.xlu0 %v1009_v10, %s1415_s12 }
 0x23b   : > { %v459_v15 = vpop.permute.xlu0 %458  ;;  %v572_v18 = vpop.permute.xlu1 %571 }
 0x23c   : > { %v464_v16 = vsel %vm344_vm3, %v459_v15, 0  ;;  %v577_v19 = vsel %vm344_vm3, %v572_v18, 0 }
 0x23d   : > { %1070 = vmatpush3.bf16.xpose.msra.mxu1 %v464_v16 }
 0x23e   : > { %1081 = vmatprep.subr.bf16.mxu1 %v1410_v0 }
 0x23f   : > { %v682_v20 = vpop.permute.xlu1 %681  ;;  %v570_v21 = vpop.permute.xlu0 %569 }
 0x240   : > { %v687_v22 = vsel %vm344_vm3, %v682_v20, 0 }
 0x243   : > { %v680_v23 = vpop.permute.xlu0 %679 }
 0x244   : > { %1072 = vmatmul.mubr.msk.bf16.vlgmr.msra.gmra.mrb[4].mxu1 %vm344_vm3, %v454_v17 }
 0x245   : > { %1082 = vmatpush3.bf16.xpose.msra.mxu1 %v577_v19  ;;  %1083 = vmatprep.mubr.msk.bf16.mxu1 %vm1411_vm0, %v1410_v0 }
 0x246   : > { %1093 = vmatprep.subr.bf16.mxu1 %v1410_v0 }
 0x24c   : > { %1084 = vmatmul.mubr.msk.bf16.vlgmr.msra.gmra.mrb[8].mxu1 %vm344_vm3, %v570_v21 }
 0x24d   : > { %1094 = vmatpush3.bf16.xpose.msra.mxu1 %v687_v22  ;;  %1095 = vmatprep.mubr.msk.bf16.mxu1 %vm1411_vm0, %v1410_v0 }
 0x24e   : > { %1105 = vmatprep.subr.bf16.mxu1 %v1410_v0 }
 0x254   : > { %1096 = vmatmul.mubr.msk.bf16.vlgmr.msra.gmra.mrb[12].mxu1 %vm344_vm3, %v680_v23 }
 0x255   : > { %1109 = vmatprep.mubr.msk.bf16.mxu1 %vm1411_vm0, %v1410_v0 }
 0x2a2   : > { %v385_v24 = vpop.f32.mrb[0].mxu1 }
 0x2a3   : > { %v1061_v25 = vpop.f32.mrb[1].mxu1  ;;  %v391_v26 = vsel %vm344_vm3, %v385_v24, -inf }
 0x2a4   : > { %392 = vmax.xlane.f32.xlu1 %v391_v26  ;;  %v388_v27 = vpop.f32.mrb[2].mxu1 }
 0x2a5   : > { %v1062_v28 = vpop.f32.mrb[3].mxu1 }
 0x317   : > { %v500_v29 = vpop.f32.mrb[4].mxu1 }
 0x318   : > { %v1073_v30 = vpop.f32.mrb[5].mxu1  ;;  %v506_v31 = vsel %vm344_vm3, %v500_v29, -inf }
 0x319   : > { %507 = vmax.xlane.f32.xlu0 %v506_v31  ;;  %v503_v32 = vpop.f32.mrb[6].mxu1  ;;  %v1213_v31 = vld [vmem:[#allocation10] sm:$0xff]  }
 0x31a   : > { %v1074_v33 = vpop.f32.mrb[7].mxu1  ;;  %1106 = vmatpush3.bf16.msra.mxu1 %v1213_v31 }
 0x31b   : > { %1107 = vmatprep.subr.bf16.mxu1 %v1410_v0 }
 0x31f   : > { %v613_v34 = vpop.f32.mrb[8].mxu1 }
 0x320   : > { %v1085_v35 = vpop.f32.mrb[9].mxu1  ;;  %v619_v36 = vsel %vm344_vm3, %v613_v34, -inf }
 0x321   : > { %620 = vmax.xlane.f32.xlu0 %v619_v36  ;;  %v616_v37 = vpop.f32.mrb[10].mxu1  ;;  %v1214_v36 = vld [vmem:[#allocation10 + $0x8] sm:$0xff]  }
 0x322   : > { %v1086_v38 = vpop.f32.mrb[11].mxu1  ;;  %1108 = vmatpush3.bf16.msra.mxu1 %v1214_v36 }
 0x327   : > { %v723_v39 = vpop.f32.mrb[12].mxu1 }
 0x328   : > { %v1097_v40 = vpop.f32.mrb[13].mxu1  ;;  %v729_v41 = vsel %vm344_vm3, %v723_v39, -inf }
 0x329   : > { %730 = vmax.xlane.f32.xlu1 %v729_v41  ;;  %v726_v42 = vpop.f32.mrb[14].mxu1 }
 0x32a   : > { %v1098_v43 = vpop.f32.mrb[15].mxu1 }
 0x331   : > { %v393_v44 = vpop.xlane.xlu1 %392 }
 0x332   : > { %v394_v45 = vsub.f32 %v385_v24, %v393_v44 }
 0x334   : > { %v395_v46 = vmul.f32 1.442695, %v394_v45 }
 0x336   : > { %1215 = vpow2.f32 %v395_v46 }
 0x337   : > { %332 = vrot.lane.b32.xlu0 %v1654_v5, %s1416_s13 }
 0x340   : > { %v1216_v47 = vpop.eup %1215 }
 0x341   : > { %v397_v48 = vsel %vm344_vm3, %v1216_v47, 0.0 }
 0x342   : > { %398 = vadd.xlane.f32.xlu1 %v397_v48 }
 0x3a6   : > { %v508_v49 = vpop.xlane.xlu0 %507 }
 0x3a7   : > { %v509_v50 = vsub.f32 %v500_v29, %v508_v49 }
 0x3a9   : > { %v510_v51 = vmul.f32 1.442695, %v509_v50 }
 0x3ab   : > { %1217 = vpow2.f32 %v510_v51  ;;  %v1018_v51 = vld [vmem:[%s1780_s3] ss:$0 sm:$0xff] }
 0x3ae   : > { %v621_v52 = vpop.xlane.xlu0 %620 }
 0x3af   : > { %v622_v53 = vsub.f32 %v613_v34, %v621_v52 }
 0x3b1   : > { %v623_v54 = vmul.f32 1.442695, %v622_v53 }
 0x3b2   : > { %v333_v55 = vpop.permute.xlu0 %332 }
 0x3b3   : > { %1219 = vpow2.f32 %v623_v54  ;;  %335 = vst.msk [vmem:[#allocation4] sm:$0xf] %vm323_vm2, %v333_v55 }
 0x3b5   : > { %v1218_v56 = vpop.eup %1217 }
 0x3b6   : > { %v731_v57 = vpop.xlane.xlu1 %730  ;;  %v512_v58 = vsel %vm344_vm3, %v1218_v56, 0.0 }
 0x3b7   : > { %v732_v59 = vsub.f32 %v723_v39, %v731_v57  ;;  %513 = vadd.xlane.f32.xlu1 %v512_v58 }
 0x3b9   : > { %v733_v60 = vmul.f32 1.442695, %v732_v59 }
 0x3ba   : > { %v343_v61 = vld [vmem:[#allocation4] sm:$0xf] }
 0x3bb   : > { %1221 = vpow2.f32 %v733_v60  ;;  %v408_v62 = vsel %vm406_vm4, %v343_v61, 0  ;;  %v1012_v63 = vcombine.low %v343_v61, %v343_v61 }
 0x3bc   : > { %1064 = vmatpush3.bf16.msra.mxu0 %v408_v62 }
 0x3bd   : > { %v1220_v1 = vpop.eup %1219  ;;  %631 = vrot.lane.b32.xlu0 %v1012_v63, %s1414_s27  ;;  %1075 = vmatprep.subr.bf16.mxu0 %v1410_v0  ;;  %s1317_s27 = scalar_lea.vmem %s1729_s6, 128 }
 0x3be   : > { %v625_v2 = vsel %vm344_vm3, %v1220_v1, 0.0  ;;  %p1318_p8 = scmp.ne.s32.totalorder %s1729_s6, %s1317_s27 }
 0x3bf   : > { %626 = vadd.xlane.f32.xlu1 %v625_v2 }
 0x3c0   : > { %p1319_p1 = pnand %p1318_p8, %p1796_p2 }
 0x3c1   : > { %741 = vrot.lane.b32.xlu0 %v1012_v63, %s1415_s12  ;;  %s1420_s12 = smov [#allocation11]  }
 0x3c2   : > { %p1320_p10 = pneg %p1319_p1  ;;  %s1321_s13 = sshll.u32 %s1420_s12, 4  ;;  %s1322_s13 = int_to_ptr.vmem [resolvable:$false] %s1321_s13 }
 0x3c3   : > { %p1324_p3 = scmp.lt.s32.totalorder %s1729_s6, %s1322_s13 }
 0x3c5   : > { %v1222_v3 = vpop.eup %1221 }
 0x3c6   : > { %v735_v4 = vsel %vm344_vm3, %v1222_v3, 0.0 }
 0x3c7   : > { %736 = vadd.xlane.f32.xlu1 %v735_v4 }
 0x3cf   : > { %v399_v5 = vpop.xlane.xlu1 %398 }
 0x3d0   : > { %1223 = vrcp.f32 %v399_v5 }
 0x3d8   : > { %521 = vrot.lane.b32.xlu1 %v1012_v63, %s1413_s25  ;;  %s1727_s25 = scalar_lea.hbm %s1781_s4, %s1023_s7 }
 0x3da   : > { %v1224_v6 = vpop.eup %1223 }
 0x3db   : > { %v401_v7 = vmul.f32 %v1224_v6, %v1216_v47 }
 0x3dd   : > { %v402_v8 = vpack.c.bf16 %v401_v7, %v401_v7 }
 0x3df   : > { %1066 = vmatmul.mubr.msk.bf16.vlgmr.msra.gmra.mrb[4].mxu0 %vm344_vm3, %v402_v8 }
 0x3e0   : > { %1077 = vmatprep.mubr.msk.bf16.mxu0 %vm1411_vm0, %v1410_v0 }
 0x42f   : > { %v632_v16 = vpop.permute.xlu0 %631 }
 0x430   : > { %v637_v19 = vsel %vm406_vm4, %v632_v16, 0 }
 0x433   : > { %v742_v21 = vpop.permute.xlu0 %741 }
 0x434   : > { %v747_v24 = vsel %vm406_vm4, %v742_v21, 0 }
 0x444   : > { %v514_v9 = vpop.xlane.xlu1 %513 }
 0x445   : > { %1225 = vrcp.f32 %v514_v9 }
 0x44c   : > { %v627_v10 = vpop.xlane.xlu1 %626 }
 0x44d   : > { %1227 = vrcp.f32 %v627_v10 }
 0x44f   : > { %v1226_v11 = vpop.eup %1225 }
 0x450   : > { %v516_v13 = vmul.f32 %v1226_v11, %v1218_v56 }
 0x452   : > { %v517_v17 = vpack.c.bf16 %v516_v13, %v516_v13 }
 0x454   : > { %v737_v12 = vpop.xlane.xlu1 %736 }
 0x455   : > { %1229 = vrcp.f32 %v737_v12 }
 0x457   : > { %v1228_v18 = vpop.eup %1227 }
 0x458   : > { %v522_v14 = vpop.permute.xlu1 %521  ;;  %v629_v20 = vmul.f32 %v1228_v18, %v1220_v1 }
 0x459   : > { %v527_v15 = vsel %vm406_vm4, %v522_v14, 0 }
 0x45a   : > { %1076 = vmatpush3.bf16.msra.mxu0 %v527_v15  ;;  %v630_v22 = vpack.c.bf16 %v629_v20, %v629_v20 }
 0x45b   : > { %1087 = vmatprep.subr.bf16.mxu0 %v1410_v0 }
 0x45d   : > { %1078 = vmatmul.mubr.msk.bf16.vlgmr.msra.gmra.mrb[8].mxu0 %vm344_vm3, %v517_v17 }
 0x45e   : > { %1088 = vmatpush3.bf16.msra.mxu0 %v637_v19  ;;  %1089 = vmatprep.mubr.msk.bf16.mxu0 %vm1411_vm0, %v1410_v0 }
 0x45f   : > { %1099 = vmatprep.subr.bf16.mxu0 %v1410_v0  ;;  %v1230_v23 = vpop.eup %1229 }
 0x460   : > { %v739_v25 = vmul.f32 %v1230_v23, %v1222_v3 }
 0x462   : > { %v740_v26 = vpack.c.bf16 %v739_v25, %v739_v25 }
 0x465   : > { %1090 = vmatmul.mubr.msk.bf16.vlgmr.msra.gmra.mrb[12].mxu0 %vm344_vm3, %v630_v22 }
 0x466   : > { %1100 = vmatpush3.bf16.msra.mxu0 %v747_v24  ;;  %1101 = vmatprep.mubr.msk.bf16.mxu0 %vm1411_vm0, %v1410_v0 }
 0x46d   : > { %1102 = vmatmul.mubr.msk.bf16.vlgmr.msra.gmra.mrb[16].mxu0 %vm344_vm3, %v740_v26 }
 0x4b2   : > { %v444_v27 = vpop.f32.mrb[4].mxu0 }
 0x4b3   : > { %v1067_v28 = vpop.f32.mrb[5].mxu0 }
 0x4b4   : > { %v447_v29 = vpop.f32.mrb[6].mxu0 }
 0x4b5   : > { %v1068_v30 = vpop.f32.mrb[7].mxu0 }
 0x530   : > { %v563_v32 = vpop.f32.mrb[8].mxu0 }
 0x531   : > { %790 = vrot.lane.b32.xlu0 %v563_v32, %s1417_s29  ;;  %v1079_v33 = vpop.f32.mrb[9].mxu0  ;;  %s1323_s29 = scalar_lea.vmem %s1322_s13, 256 }
 0x532   : > { %v566_v34 = vpop.f32.mrb[10].mxu0  ;;  %p1325_p5 = scmp.lt.s32.totalorder %s1323_s29, %s1317_s27 }
 0x533   : > { %v1080_v35 = vpop.f32.mrb[11].mxu0 }
 0x534   : > { %p1326_p9 = por %p1325_p5, %p1324_p3 }
 0x536   : > { %p1327_p11 = pnand %p1326_p9, %p1320_p10 }
 0x538   : > { %v673_v37 = vpop.f32.mrb[12].mxu0 }
 0x539   : > { %794 = vrot.lane.b32.xlu0 %v673_v37, %s1418_s14  ;;  %v1091_v38 = vpop.f32.mrb[13].mxu0 }
 0x53a   : > { %v676_v39 = vpop.f32.mrb[14].mxu0 }
 0x53b   : > { %v1092_v40 = vpop.f32.mrb[15].mxu0 }
 0x540   : > { %v783_v41 = vpop.f32.mrb[16].mxu0 }
 0x541   : > { %798 = vrot.lane.b32.xlu1 %v783_v41, %s1419_s10  ;;  %v1103_v0 = vpop.f32.mrb[17].mxu0 }
 0x542   : > { %v786_v42 = vpop.f32.mrb[18].mxu0 }
 0x543   : > { %v1104_v43 = vpop.f32.mrb[19].mxu0 }
 0x5a3   : > { %v791_v44 = vpop.permute.xlu0 %790 }
 0x5a4   : > { %v801_v46 = vsel %vm344_vm3, %v444_v27, %v791_v44 }
 0x5ab   : > { %v795_v45 = vpop.permute.xlu0 %794 }
 0x5ac   : > { %v803_v47 = vsel %vm802_vm5, %v801_v46, %v795_v45 }
 0x5b3   : > { %v799_v48 = vpop.permute.xlu1 %798 }
 0x5b4   : > { %v805_v49 = vsel %vm804_vm6, %v803_v47, %v799_v48 }
 0x5b5   : > { %v806_v50 = vpack.c.bf16 %v805_v49, %v805_v49 }
 0x5b7   : > { %1110 = vmatmul.mubr.msk.bf16.vlgmr.msra.gmra.mrb[16].mxu1 %vm278_vm1, %v806_v50 }
 0x68a   : > { %v868_v52 = vpop.f32.mrb[16].mxu1 }
 0x68b   : > { %v869_v53 = vadd.f32 %v1018_v51, %v868_v52  ;;  %v1111_v54 = vpop.f32.mrb[17].mxu1 }
 0x68c   : > { %v871_v55 = vpop.f32.mrb[18].mxu1 }
 0x68d   : > { %v1112_v56 = vpop.f32.mrb[19].mxu1  ;;  %874 = vst.msk [vmem:[%s255_s8] sm:$0xff] %vm278_vm1, %v869_v53 }
 0x68e   : > { %1330 = shalt.err (!%p1327_p11)
}
 0x68f   : > { %s1331_s28 = scalar_lea.hbm %s1727_s25, 128  ;;  %s1335_s9 = scalar_lea.hbm %s1781_s4, 256 }
 0x690   : > { %p1332_p0 = scmp.ne.s32.totalorder %s1727_s25, %s1331_s28  ;;  %p1336_p6 = scmp.lt.u32.totalorder %s1727_s25, %s1781_s4 }
 0x691   : > { %p1337_p7 = scmp.lt.u32.totalorder %s1335_s9, %s1331_s28  ;;  %p1339_p8 = scmp.lt.u32.totalorder %s1331_s28, %s1727_s25 }
 0x692   : > { %p1333_p4 = pnand %p1332_p0, %p1796_p2 }
 0x693   : > { %p1338_p12 = por %p1337_p7, %p1336_p6 }
 0x694   : > { %p1334_p13 = pneg %p1333_p4 }
 0x695   : > { %p1340_p1 = por %p1339_p8, %p1338_p12 }
 0x697   : > { %p1341_p10 = pnand %p1340_p1, %p1334_p13 }
 0x699   : > { %1344 = shalt.err (!%p1341_p10)
}
 0x69a   : > { %1123 = dma.vmem_to_hbm [thread:$0]  (%p1796_p2), %s1729_s6, 128, %s1727_s25, %s876_s18  }
 0x69b PF: > { %s902_s7 = sand.u32 1, %s1383_s15   ;;  %p1797_p3 = scmp.ne.s32.totalorder %s1789_s26, 0 }
 0x69c   : > { %p1798_p5 = scmp.ge.s32.totalorder %s1403_s20, 2  ;;  %s903_s8 = scalar_lea.sflag [#allocation7], %s902_s7 }
 0x69e   : > { %p1137_p9 = pnand %p1798_p5, %p1797_p3 }
 0x6a0   : > { %1378 = dma.done.wait (!%p1137_p9), %s903_s8, 128  }
 0x6a1   : > { %1380 = vsyncadd (!%p1137_p9), %s903_s8, 4294967168  ;;  %s21_s20 = sadd.s32 1, %s1403_s20   ;;  %s1799_s15 = smov %s1387_s16 }
 0x6a2   : > { %p18_p11 = scmp.ge.s32.totalorder %s21_s20, 4   ;;  %s1800_s16 = smov %s1391_s17 }
 0x6a3   : > { %s1801_s17 = smov %s1588_s22  ;;  %s1802_s18 = smov %s1399_s19 }
 0x6a4   : > { %s1803_s19 = smov %s1805_s5  ;;  %20 = sbr.rel (!%p18_p11) target bundleno = 7 (0x7), region = 94 }
 0x6ab   :  { %908 = vsyncpa [#allocation6], 1 }
 0x6ac   :  { %910 = vsyncpa [#allocation6 + $0x1], 1 }
 0x6ad   :  { %911 = vsyncpa [#allocation9], 1 }
 0x6ae   :  { %912 = vsyncpa [#allocation7], 1 }
 0x6af   :  { %914 = vsyncpa [#allocation7 + $0x1], 1 }

</bundles_post_ra>
